<compile_context>
chip_gen: v6e
topology: v6e:2x2x1
jax: 0.10.0
libtpu: 0.0.40
codegen_flags: <defaults>
</compile_context>

<pallas_src>
import jax
import jax.numpy as jnp
from jax.experimental import pallas as pl
from jax.experimental.pallas import tpu as pltpu


def gam_kernel(beta_ref, x_ref, mu_ref):
    # beta_ref: SMEM (4,) float32  [b0, b1, b2, b3]
    # x_ref:    VMEM (block_rows, lanes) float32 lane-dense tile of x
    # mu_ref:   VMEM (block_rows, lanes) float32 lane-dense tile of mu
    x = x_ref[...]
    b0 = beta_ref[0]
    b1 = beta_ref[1]
    b2 = beta_ref[2]
    b3 = beta_ref[3]
    # Horner form of b0 + b1*x + b2*x^2 + b3*x^3.
    mu_ref[...] = ((b3 * x + b2) * x + b1) * x + b0


def gam_forward(x, beta, *, lanes=512, max_block_rows=2048):
    """x: (N, 1) float32, beta: (4, 1) float32 -> mu: (N, 1) float32."""
    n = x.shape[0]
    beta_flat = beta.reshape(4).astype(jnp.float32)
    x_flat = x.reshape(-1).astype(jnp.float32)
    total = x_flat.shape[0]

    # --- Small-N fast path: kernel launch + forced (8, lanes) tile would be
    # pure fixed overhead for nanoseconds of work; let XLA fuse it instead.
    if total < 8 * lanes:
        b0, b1, b2, b3 = beta_flat[0], beta_flat[1], beta_flat[2], beta_flat[3]
        mu_flat = ((b3 * x_flat + b2) * x_flat + b1) * x_flat + b0
        return mu_flat.reshape(n, 1)

    # --- Pallas path: lane-dense slab, minimal padding (only to a multiple of
    # `lanes`, never to block_rows * lanes).
    rows = pl.cdiv(total, lanes)                 # >= 8 here
    padded = rows * lanes
    needs_pad = padded != total
    if needs_pad:
        x_flat = jnp.pad(x_flat, (0, padded - total))
    x2d = x_flat.reshape(rows, lanes)

    # block_rows: sublane(8)-aligned; keep the grid length >= 2 when possible
    # so the "parallel" axis can be split across v7x's two TensorCores.
    half_rows = ((pl.cdiv(rows, 2) + 7) // 8) * 8
    block_rows = max(8, min(max_block_rows, half_rows))
    grid = (pl.cdiv(rows, block_rows),)          # ragged final block is legal

    mu2d = pl.pallas_call(
        gam_kernel,
        out_shape=jax.ShapeDtypeStruct((rows, lanes), jnp.float32),
        grid=grid,
        in_specs=[
            pl.BlockSpec(memory_space=pltpu.MemorySpace.SMEM),     # beta (4,)
            pl.BlockSpec((block_rows, lanes), lambda i: (i, 0)),   # x tile
        ],
        out_specs=pl.BlockSpec((block_rows, lanes), lambda i: (i, 0)),
        compiler_params=pltpu.CompilerParams(
            dimension_semantics=("parallel",),
            vmem_limit_bytes=48 << 20),
    )(beta_flat, x2d)

    mu_flat = mu2d.reshape(-1)
    if needs_pad:
        mu_flat = mu_flat[:total]
    return mu_flat.reshape(n, 1)


def gam_forward_ref(x, beta):
    """Pure-JAX reference mirroring the PyTorch forward."""
    B = jnp.concatenate([jnp.ones_like(x), x, x ** 2, x ** 3], axis=1)
    return jnp.dot(B, beta, precision=jax.lax.Precision.HIGHEST)


if __name__ == "__main__":
    key = jax.random.PRNGKey(0)
    k_beta, k_x_small, k_x_big = jax.random.split(key, 3)

    # Deterministic parameter init (shapes from the module __init__).
    beta = jax.random.normal(k_beta, (4, 1), dtype=jnp.float32)
    log_sigma = jnp.float32(0.0)  # not used in forward()

    # Case 1: tiny N=64 -> plain-JAX fast path.
    x_small = jax.random.normal(k_x_small, (64, 1), dtype=jnp.float32)
    mu_small = jax.block_until_ready(gam_forward(x_small, beta))
    mu_small_ref = gam_forward_ref(x_small, beta)
    assert mu_small.shape == (64, 1)
    assert jnp.allclose(mu_small, mu_small_ref, atol=1e-4, rtol=1e-5), \
        "small-N mismatch vs reference"

    # Case 2: N=5000 -> Pallas kernel path, exercising lane padding (5000 is
    # not a multiple of 512) and a ragged final grid block (rows=10, block=8).
    n_big = 5000
    x_big = jax.random.normal(k_x_big, (n_big, 1), dtype=jnp.float32)
    mu_big = jax.block_until_ready(gam_forward(x_big, beta))
    mu_big_ref = gam_forward_ref(x_big, beta)
    assert mu_big.shape == (n_big, 1)
    # Horner form changes float accumulation order vs B@beta -> tolerance compare.
    assert jnp.allclose(mu_big, mu_big_ref, atol=1e-4, rtol=1e-5), \
        "kernel-path mismatch vs reference"

    print("KERNEL_OK")
</pallas_src>

<mosaic_0001>
module attributes {stable_mosaic.version = 11 : i64} {
  func.func @gam_kernel(%arg0: i32, %arg1: memref<4xf32, #tpu.memory_space<smem>>, %arg2: memref<8x512xf32, #tpu.memory_space<vmem>>, %arg3: memref<8x512xf32, #tpu.memory_space<vmem>>) attributes {dimension_semantics = [#tpu.dimension_semantics<parallel>], iteration_bounds = array<i64: 2>, scalar_prefetch = 0 : i64, scratch_operands = 0 : i64, tpu.core_type = #tpu.core_type<tc>, window_params = [{transform_indices = @transform_0, window_bounds = array<i64: 4>}, {transform_indices = @transform_1, window_bounds = array<i64: 8, 512>}, {transform_indices = @transform_2, window_bounds = array<i64: 8, 512>}]} {
    %c0 = arith.constant 0 : index
    %c0_0 = arith.constant 0 : index
    %0 = vector.load %arg2[%c0, %c0_0] : memref<8x512xf32, #tpu.memory_space<vmem>>, vector<8x512xf32>
    %c0_1 = arith.constant 0 : index
    %1 = memref.load %arg1[%c0_1] : memref<4xf32, #tpu.memory_space<smem>>
    %c1 = arith.constant 1 : index
    %2 = memref.load %arg1[%c1] : memref<4xf32, #tpu.memory_space<smem>>
    %c2 = arith.constant 2 : index
    %3 = memref.load %arg1[%c2] : memref<4xf32, #tpu.memory_space<smem>>
    %c3 = arith.constant 3 : index
    %4 = memref.load %arg1[%c3] : memref<4xf32, #tpu.memory_space<smem>>
    %5 = vector.broadcast %4 : f32 to vector<8x512xf32>
    %6 = arith.mulf %5, %0 : vector<8x512xf32>
    %7 = vector.broadcast %3 : f32 to vector<8x512xf32>
    %8 = arith.addf %6, %7 : vector<8x512xf32>
    %9 = arith.mulf %8, %0 : vector<8x512xf32>
    %10 = vector.broadcast %2 : f32 to vector<8x512xf32>
    %11 = arith.addf %9, %10 : vector<8x512xf32>
    %12 = arith.mulf %11, %0 : vector<8x512xf32>
    %13 = vector.broadcast %1 : f32 to vector<8x512xf32>
    %14 = arith.addf %12, %13 : vector<8x512xf32>
    %c0_2 = arith.constant 0 : index
    %c0_3 = arith.constant 0 : index
    %15 = vector.load %arg3[%c0_2, %c0_3] : memref<8x512xf32, #tpu.memory_space<vmem>>, vector<8x512xf32>
    tpu.vector_store %arg3[%c0_2, %c0_3], %14 {strides = array<i32>} : memref<8x512xf32, #tpu.memory_space<vmem>>, vector<8x512xf32>,
    return
  }
  func.func @transform_0(%arg0: i32) -> i32 {
    %c0_i32 = arith.constant 0 : i32
    %c0_i32_0 = arith.constant 0 : i32
    return %c0_i32 : i32
  }
  func.func @transform_1(%arg0: i32) -> (i32, i32) {
    %c0_i32 = arith.constant 0 : i32
    %c0_i32_0 = arith.constant 0 : i32
    return %arg0, %c0_i32 : i32, i32
  }
  func.func @transform_2(%arg0: i32) -> (i32, i32) {
    %c0_i32 = arith.constant 0 : i32
    %c0_i32_0 = arith.constant 0 : i32
    return %arg0, %c0_i32 : i32, i32
  }
}

</mosaic_0001>

<bundles_post_ra>
// kernel: tpu_custom_call.1
= control target key start
LH: loop header
LB: loop body
LE: loop exit
PB: predicated region body
PF: predicated region fallthrough
CT: control target
= control target key end

     0   :  { %7 = vsyncpa [#allocation5], 0  ;;  %s676_s0 = inlined_call_operand.hbm [shape: f32[4], index: 0, kind: input, shape index: {}]   ;;  %s677_s1 = inlined_call_operand.hbm [shape: f32[10,512], index: 1, kind: input, shape index: {}]   ;;  %s678_s2 = inlined_call_operand.hbm [shape: f32[10,512], index: 2, kind: output, shape index: {}]  }
   0x1   :  { %8 = vsyncpa [#allocation3], 0 }
   0x2   :  { %10 = vsyncpa [#allocation3 + $0x1], 0 }
   0x3   :  { %11 = vsyncpa [#allocation4], 0 }
   0x4   :  { %13 = vsyncpa [#allocation4 + $0x1], 0  ;;  %s514_s9 = smov 0   ;;  %s516_s10 = smov 0  }
   0x5   :  { %s518_s11 = smov 0   ;;  %s520_s12 = smov 0  }
   0x6 LB: > { %s535_s13 = sadd.s32 4294967295, %s494_s12   ;;  %s309_s14 = sadd.s32 4294967294, %s494_s12   ;;  %s494_s12 = sphi %s520_s12, %s698_s12   ;;  %s490_s11 = sphi %s518_s11, %s697_s11   ;;  %s486_s10 = sphi %s516_s10, %s696_s10   ;;  %s482_s9 = sphi %s514_s9, %s695_s9  }
   0x7   : > { %p60_p0 = scmp.ne.s32.totalorder %s486_s10, %s482_s9  ;;  %p679_p1 = scmp.eq.s32.totalorder %s535_s13, 0 }
   0x8   : > { %p84_p2 = scmp.eq.s32.totalorder %s535_s13, 1  ;;  %p90_p3 = scmp.eq.s32.totalorder %s309_s14, 1 }
   0x9   : > { %p544_p4 = por %p679_p1, %p60_p0  ;;  %p310_p5 = scmp.ge.s32.totalorder %s494_s12, 1 }
   0xa   : > { %p549_p6 = por %p90_p3, %p60_p0  ;;  %p97_p7 = scmp.lt.s32.totalorder %s494_s12, 3 }
   0xb   : > { %s683_s15 = scalar_select %p544_p4, 1, 0 }
   0xc   : > { %s684_s16 = scalar_select %p549_p6, 1, 0 }
   0xd   : > { %p554_p8 = pnand %p310_p5, %p97_p7  ;;  %s560_s18 = sadd.s32 1, %s494_s12  }
   0xe   : > { %s44_s19 = ssub.s32 %s494_s12, %s560_s18  ;;  %s47_s20 = sadd.s32 1, %s490_s11 }
   0xf   : > { %s685_s17 = scalar_select %p554_p8, 1, 0 }
  0x10   : > { %p338_p10 = pneg %p554_p8  ;;  %p45_p12 = scmp.eq.s32.totalorder %s44_s19, 0 }
  0x11   : > { %p54_p13 = scmp.ne.s32.totalorder %s490_s11, %s486_s10  ;;  %p55_p0 = scmp.eq.s32.totalorder %s494_s12, 0 }
  0x12   : > { %p339_p11 = pnand %p338_p10, %p679_p1  ;;  %p351_p3 = scmp.lt.s32.totalorder %s494_s12, 2 }
  0x13   : > { %s496_s21 = smov [#allocation2]   ;;  %p56_p5 = por %p55_p0, %p54_p13 }
  0x14   : > { %341 = dma.hbm_to_smem (!%p339_p11), %s676_s0, 16, %s496_s21, [#allocation5]  }
  0x15   : > { %s577_s24 = scalar_select %p45_p12, %s490_s11, %s47_s20  }
  0x16   : > { %p581_p7 = por %p84_p2, %p54_p13  ;;  %s119_s26 = sand.u32 1, %s490_s11  }
  0x17   : > { %s328_s27 = sshll.u32 %s494_s12, 9  ;;  %s313_s28 = sshll.u32 %s119_s26, 5 }
  0x18   : > { %s686_s25 = scalar_select %p581_p7, 1, 0 }
  0x19   : > { %s590_s3 = scalar_lea.hbm %s677_s1, %s328_s27  ;;  %s123_s4 = scalar_lea.vmem [#allocation6], %s313_s28 }
  0x1a   : > { %s131_s5 = sshll.u32 %s123_s4, 4  ;;  %p592_p10 = pnand %p351_p3, %p56_p5  ;;  %s132_s5 = int_to_ptr.vmem [resolvable:$true] %s131_s5 }
  0x1b   : > { %s120_s7 = scalar_lea.sflag [#allocation3], %s119_s26  ;;  %s398_s8 = scalar_lea.hbm %s590_s3, 512 }
  0x1c   : > { %p399_p2 = scmp.ne.s32.totalorder %s590_s3, %s398_s8  ;;  %p400_p11 = pneg %p592_p10 }
  0x1d   : > { %s403_s20 = scalar_lea.hbm %s677_s1, 1024  ;;  %p404_p0 = scmp.lt.s32.totalorder %s590_s3, %s677_s1 }
  0x1e   : > { %p401_p12 = pnand %p400_p11, %p399_p2  ;;  %p405_p3 = scmp.lt.s32.totalorder %s403_s20, %s398_s8 }
  0x20   : > { %p402_p13 = pneg %p401_p12  ;;  %p406_p5 = por %p405_p3, %p404_p0 }
  0x22   : > { %p407_p9 = pnand %p406_p5, %p402_p13 }
  0x24   : > { %410 = shalt.err (!%p407_p9)
}
  0x25   : > { %s411_s23 = scalar_lea.vmem %s132_s5, 512  ;;  %s497_s26 = smov [#allocation6]  }
  0x26   : > { %p412_p1 = scmp.ne.s32.totalorder %s132_s5, %s411_s23  ;;  %s416_s27 = sshll.u32 %s497_s26, 4  ;;  %s417_s27 = int_to_ptr.vmem [resolvable:$false] %s416_s27 }
  0x27   : > { %s418_s28 = scalar_lea.vmem %s417_s27, 1024  ;;  %p419_p2 = scmp.lt.s32.totalorder %s132_s5, %s417_s27 }
  0x28   : > { %p414_p6 = pnand %p412_p1, %p400_p11  ;;  %p420_p12 = scmp.lt.s32.totalorder %s418_s28, %s411_s23 }
  0x2a   : > { %p415_p7 = pneg %p414_p6  ;;  %p421_p4 = por %p420_p12, %p419_p2 }
  0x2c   : > { %p422_p8 = pnand %p421_p4, %p415_p7 }
  0x2e   : > { %425 = shalt.err (!%p422_p8)
}
  0x2f   : > { %345 = dma.hbm_to_vmem [thread:$0]  (!%p592_p10), %s590_s3, 512, %s132_s5, %s120_s7  }
  0x30   : > { %p688_p13 = scmp.ne.s32.totalorder %s685_s17, 0 }
  0x31   : > { %p689_p9 = scmp.eq.s32.totalorder (!%p688_p13), %s535_s13, 0 }
  0x32   : > { %140 = sbr.rel (%p688_p13) target bundleno = 96 (0x60), region = 28 }
  0x37   : > { %469 = dma.done.wait (%p689_p9), [#allocation5], 16   ;;  %p690_p1 = pmov %p689_p9 }
  0x38   : > { %s617_s29 = sand.u32 1, %s486_s10   ;;  %p691_p4 = scmp.ne.s32.totalorder %s683_s15, 0 }
  0x39   : > { %471 = vsyncadd (%p690_p1), [#allocation5], 4294967280  ;;  %s318_s30 = sshll.u32 %s617_s29, 5  ;;  %s147_s4 = scalar_lea.sflag [#allocation3], %s617_s29 }
  0x3a   : > { %s150_s3 = scalar_lea.vmem [#allocation6], %s318_s30 }
  0x3b   : > { %473 = dma.done.wait (%p691_p4), %s147_s4, 512  }
  0x3c   : > { %475 = vsyncadd (%p691_p4), %s147_s4, 4294966784 }
  0x3d   : > { %155 = sfence }
  0x3e   : > { %s321_s17 = sld [smem:[#allocation2 + $0x2]]  ;;  %v172_v0 = vld [vmem:[%s150_s3] sm:$0xff]  ;;  %v173_v1 = vld [vmem:[%s150_s3 + $0x8] sm:$0xff]  ;;  %v174_v2 = vld [vmem:[%s150_s3 + $0x10] sm:$0xff]  ;;  %s329_s15 = sshll.u32 %s535_s13, 9 }
  0x3f   : > { %s322_s5 = sld [smem:[#allocation2 + $0x3]]  ;;  %v175_v3 = vld [vmem:[%s150_s3 + $0x18] sm:$0xff]  ;;  %s171_s8 = scalar_lea.vmem [#allocation7], %s318_s30 }
  0x40   : > { %s320_s6 = sld [smem:[#allocation2 + $0x1]]  ;;  %s227_s14 = sshll.u32 %s171_s8, 4  ;;  %s635_s14 = int_to_ptr.vmem [resolvable:$true] %s227_s14 }
  0x41   : > { %s176_s7 = sld [smem:[#allocation2]]  ;;  %s633_s21 = scalar_lea.hbm %s678_s2, %s329_s15 }
  0x42   : > { %s213_s13 = scalar_lea.sflag [#allocation4], %s617_s29  ;;  %s426_s22 = scalar_lea.vmem %s635_s14, 512 }
  0x43   : > { %p427_p6 = scmp.ne.s32.totalorder %s635_s14, %s426_s22  ;;  %p692_p8 = scmp.ne.s32.totalorder %s686_s25, 0 }
  0x44   : > { %v185_v5 = vstv %s321_s17  ;;  %s498_s23 = smov [#allocation7]  }
  0x45   : > { %v180_v4 = vstv %s322_s5  ;;  %p428_p7 = pnand %p427_p6, %p692_p8  ;;  %s430_s26 = sshll.u32 %s498_s23, 4  ;;  %s431_s26 = int_to_ptr.vmem [resolvable:$false] %s430_s26 }
  0x46   : > { %v181_v6 = vmul.f32 %v180_v4, %v172_v0  ;;  %v182_v7 = vmul.f32 %v180_v4, %v173_v1  ;;  %v183_v8 = vmul.f32 %v180_v4, %v174_v2  ;;  %v184_v9 = vmul.f32 %v180_v4, %v175_v3  ;;  %s432_s27 = scalar_lea.vmem %s431_s26, 1024  ;;  %p433_p11 = scmp.lt.s32.totalorder %s635_s14, %s431_s26 }
  0x47   : > { %v194_v14 = vstv %s320_s6  ;;  %v203_v23 = vstv %s176_s7  ;;  %p429_p10 = pneg %p428_p7  ;;  %p434_p0 = scmp.lt.s32.totalorder %s432_s27, %s426_s22 }
  0x48   : > { %v186_v10 = vadd.f32 %v185_v5, %v181_v6  ;;  %v187_v11 = vadd.f32 %v185_v5, %v182_v7  ;;  %v188_v12 = vadd.f32 %v185_v5, %v183_v8  ;;  %v189_v13 = vadd.f32 %v185_v5, %v184_v9 }
  0x49   : > { %p435_p3 = por %p434_p0, %p433_p11 }
  0x4a   : > { %v190_v15 = vmul.f32 %v186_v10, %v172_v0  ;;  %v191_v16 = vmul.f32 %v187_v11, %v173_v1  ;;  %v192_v17 = vmul.f32 %v188_v12, %v174_v2  ;;  %v193_v18 = vmul.f32 %v189_v13, %v175_v3 }
  0x4b   : > { %p436_p5 = pnand %p435_p3, %p429_p10 }
  0x4c   : > { %v195_v19 = vadd.f32 %v194_v14, %v190_v15  ;;  %v196_v20 = vadd.f32 %v194_v14, %v191_v16  ;;  %v197_v21 = vadd.f32 %v194_v14, %v192_v17  ;;  %v198_v22 = vadd.f32 %v194_v14, %v193_v18 }
  0x4e   : > { %v199_v24 = vmul.f32 %v195_v19, %v172_v0  ;;  %v200_v25 = vmul.f32 %v196_v20, %v173_v1  ;;  %v201_v26 = vmul.f32 %v197_v21, %v174_v2  ;;  %v202_v27 = vmul.f32 %v198_v22, %v175_v3 }
  0x50   : > { %v204_v28 = vadd.f32 %v203_v23, %v199_v24  ;;  %v205_v29 = vadd.f32 %v203_v23, %v200_v25  ;;  %v206_v30 = vadd.f32 %v203_v23, %v201_v26  ;;  %v207_v31 = vadd.f32 %v203_v23, %v202_v27 }
  0x52   : > { %208 = vst [vmem:[%s171_s8] sm:$0xff] %v204_v28  ;;  %209 = vst [vmem:[%s171_s8 + $0x8] sm:$0xff] %v205_v29 }
  0x53   : > { %210 = vst [vmem:[%s171_s8 + $0x10] sm:$0xff] %v206_v30  ;;  %211 = vst [vmem:[%s171_s8 + $0x18] sm:$0xff] %v207_v31 }
  0x54   : > { %439 = shalt.err (!%p436_p5)
}
  0x55   : > { %s440_s28 = scalar_lea.hbm %s633_s21, 512  ;;  %s444_s4 = scalar_lea.hbm %s678_s2, 1024 }
  0x56   : > { %p441_p2 = scmp.ne.s32.totalorder %s633_s21, %s440_s28  ;;  %p445_p9 = scmp.lt.s32.totalorder %s633_s21, %s678_s2 }
  0x57   : > { %p446_p1 = scmp.lt.s32.totalorder %s444_s4, %s440_s28 }
  0x58   : > { %p442_p12 = pnand %p441_p2, %p692_p8 }
  0x59   : > { %p447_p4 = por %p446_p1, %p445_p9 }
  0x5a   : > { %p443_p13 = pneg %p442_p12 }
  0x5c   : > { %p448_p6 = pnand %p447_p4, %p443_p13 }
  0x5e   : > { %451 = shalt.err (!%p448_p6)
}
  0x5f   : > { %336 = dma.vmem_to_hbm [thread:$0]  (%p692_p8), %s635_s14, 512, %s633_s21, %s213_s13  }
  0x60 PF: > { %s239_s5 = sand.u32 1, %s482_s9   ;;  %p693_p7 = scmp.ne.s32.totalorder %s684_s16, 0 }
  0x61   : > { %p694_p10 = scmp.ge.s32.totalorder %s494_s12, 2  ;;  %s240_s6 = scalar_lea.sflag [#allocation4], %s239_s5 }
  0x63   : > { %p347_p11 = pnand %p694_p10, %p693_p7 }
  0x65   : > { %p348_p0 = pneg %p347_p11 }
  0x67   : > { %477 = dma.done.wait (%p348_p0), %s240_s6, 512  }
  0x68   : > { %479 = vsyncadd (%p348_p0), %s240_s6, 4294966784  ;;  %p16_p3 = scmp.ge.s32.totalorder %s560_s18, 4   ;;  %s695_s9 = smov %s486_s10 }
  0x69   : > { %s696_s10 = smov %s490_s11  ;;  %s697_s11 = smov %s577_s24 }
  0x6a   : > { %s698_s12 = smov %s560_s18  ;;  %18 = sbr.rel (!%p16_p3) target bundleno = 6 (0x6), region = 78 }
  0x6f   :  { %245 = vsyncpa [#allocation3], 1 }
  0x70   :  { %247 = vsyncpa [#allocation3 + $0x1], 1 }
  0x71   :  { %248 = vsyncpa [#allocation4], 1 }
  0x72   :  { %250 = vsyncpa [#allocation4 + $0x1], 1 }
  0x73   :  { %251 = vsyncpa [#allocation5], 1 }
  0x74   :  { %253 = vsyncpa [#allocation5 + $0x1], 1 }

</bundles_post_ra>
